<compile_context>
chip_gen: v5e
topology: v5e:2x2
jax: 0.10.0
libtpu: 0.0.40
codegen_flags: <defaults>
</compile_context>

<pallas_src>
import functools

import jax
import jax.numpy as jnp
from jax import lax
from jax.experimental import pallas as pl
from jax.experimental.pallas import tpu as pltpu

HIDDEN = 64


def _round_up(x, m):
    return ((x + m - 1) // m) * m


def _pick_tile(b_pad):
    # Prefer >=2 grid steps (v7x megacore sharding + DMA/compute overlap),
    # then the largest tile (<=1024 rows) that divides the padded batch.
    for min_steps in (2, 1):
        for t in (1024, 512, 256, 128):
            if b_pad % t == 0 and b_pad // t >= min_steps:
                return t
    return 128


def _value_mlp_kernel(x_ref, w1_ref, b1_ref, w2_ref, b2_ref, w3_ref, b3_ref,
                      o_ref):
    # x block: (tile, state_dim) bf16 -- natural layout, contiguous DMA.
    x = x_ref[...]

    # Layer 1: contract state_dim of both operands -> (64, tile).
    # Batch moves onto the lane axis without any wrapper-side transpose.
    h1 = lax.dot_general(
        w1_ref[...], x,
        dimension_numbers=(((1,), (1,)), ((), ())),
        preferred_element_type=jnp.float32)
    h1 = jnp.maximum(h1 + b1_ref[...], 0.0).astype(jnp.bfloat16)

    # Layer 2: (64, 64) @ (64, tile) -> (64, tile).
    h2 = jnp.dot(w2_ref[...], h1, preferred_element_type=jnp.float32)
    h2 = jnp.maximum(h2 + b2_ref[...], 0.0).astype(jnp.bfloat16)

    # Layer 3 on the MXU: (1, 64) @ (64, tile) -> (1, tile), lane-dense.
    out = jnp.dot(w3_ref[...], h2,
                  preferred_element_type=jnp.float32) + b3_ref[...]
    o_ref[...] = out.astype(o_ref.dtype)


def _value_network_forward(state, params, batch_tile=None):
    """ValueNetwork forward pass with a fused Pallas kernel.

    state : (B, state_dim) float32
    params: dict with
        w1 (64, state_dim), b1 (64, 1),
        w2 (64, 64),        b2 (64, 1),
        w3 (1, 64),         b3 (1, 1)
    returns: (B, 1) float32
    """
    B, state_dim = state.shape

    if batch_tile is None:
        B_pad = _round_up(B, 128)          # bound pad waste to <128 rows
        batch_tile = _pick_tile(B_pad)
    else:
        batch_tile = _round_up(int(batch_tile), 128)
        B_pad = _round_up(B, batch_tile)

    x = state
    if B_pad != B:
        # Zero rows are numerically inert; they are sliced off below.
        x = jnp.pad(x, ((0, B_pad - B), (0, 0)))
    x = x.astype(jnp.bfloat16)

    # bf16 MXU operands, f32 biases.
    w1 = params["w1"].astype(jnp.bfloat16)
    w2 = params["w2"].astype(jnp.bfloat16)
    w3 = params["w3"].astype(jnp.bfloat16)
    b1 = params["b1"].astype(jnp.float32)
    b2 = params["b2"].astype(jnp.float32)
    b3 = params["b3"].astype(jnp.float32)

    grid = (B_pad // batch_tile,)

    def full(a):
        # Weights/biases are tiny; every grid step sees the whole array.
        return pl.BlockSpec(a.shape, lambda i: (0,) * a.ndim)

    flops = 2 * B_pad * (state_dim * HIDDEN + HIDDEN * HIDDEN + HIDDEN)
    bytes_accessed = (B_pad * state_dim * 2            # x stream (bf16)
                      + B_pad * 4                      # output row (f32)
                      + (w1.size + w2.size + w3.size) * 2
                      + (b1.size + b2.size + b3.size) * 4)

    out_t = pl.pallas_call(
        _value_mlp_kernel,
        out_shape=jax.ShapeDtypeStruct((1, B_pad), jnp.float32),
        grid_spec=pltpu.PrefetchScalarGridSpec(
            num_scalar_prefetch=0,
            grid=grid,
            in_specs=[
                pl.BlockSpec((batch_tile, state_dim), lambda i: (i, 0)),  # x
                full(w1), full(b1),
                full(w2), full(b2),
                full(w3), full(b3),
            ],
            out_specs=pl.BlockSpec((1, batch_tile), lambda i: (0, i)),
        ),
        compiler_params=pltpu.CompilerParams(
            dimension_semantics=("parallel",)),
        cost_estimate=pl.CostEstimate(flops=flops, transcendentals=0,
                                      bytes_accessed=bytes_accessed),
    )(x, w1, b1, w2, b2, w3, b3)

    # (1, B_pad) lane-dense row -> (B, 1) column; drop the padded rows.
    return out_t[0, :B].reshape(B, 1)


# jit fuses the pad/cast/slice glue around the microsecond-scale kernel.
value_network_forward = jax.jit(_value_network_forward,
                                static_argnames=("batch_tile",))


def init_params(key, state_dim, hidden=HIDDEN):
    """Deterministic parameter init (Kaiming-uniform-ish, like torch Linear)."""
    ks = jax.random.split(key, 6)

    def linear_init(kw, kb, fan_in, fan_out):
        bound = 1.0 / jnp.sqrt(fan_in)
        # (out, in) orientation, biases as (out, 1) columns.
        w = jax.random.uniform(kw, (fan_out, fan_in), jnp.float32,
                               minval=-bound, maxval=bound)
        b = jax.random.uniform(kb, (fan_out, 1), jnp.float32,
                               minval=-bound, maxval=bound)
        return w, b

    w1, b1 = linear_init(ks[0], ks[1], state_dim, hidden)
    w2, b2 = linear_init(ks[2], ks[3], hidden, hidden)
    w3, b3 = linear_init(ks[4], ks[5], hidden, 1)   # w3 is a (1, hidden) row
    return {"w1": w1, "b1": b1, "w2": w2, "b2": b2, "w3": w3, "b3": b3}


# TODO(synk): save_checkpoint / load_checkpoint are host-side file I/O with no
# Pallas equivalent; only the forward pass is implemented here.


if __name__ == "__main__":
    key = jax.random.PRNGKey(0)
    k_params, k_state = jax.random.split(key)

    # Small, deliberately ragged batch to exercise padding + multi-step grid.
    batch, state_dim = 300, 32
    params = init_params(k_params, state_dim)
    state = jax.random.normal(k_state, (batch, state_dim), jnp.float32)

    value = value_network_forward(state, params)
    value = jax.block_until_ready(value)

    # Reference check in plain JAX f32 (PyTorch semantics: y = x @ W.T + b).
    h1 = jnp.maximum(state @ params["w1"].T + params["b1"][:, 0], 0.0)
    h2 = jnp.maximum(h1 @ params["w2"].T + params["b2"][:, 0], 0.0)
    ref = h2 @ params["w3"].T + params["b3"][0]
    assert value.shape == (batch, 1)
    # bf16-streamed MXU operands -> relaxed tolerance vs. the f32 reference.
    assert jnp.allclose(value, ref, atol=5e-2, rtol=5e-2)

    print("KERNEL_OK")
</pallas_src>

<mosaic_0001>
module attributes {stable_mosaic.version = 11 : i64} {
  func.func @_value_mlp_kernel(%arg0: i32, %arg1: memref<128x32xbf16, #tpu.memory_space<vmem>>, %arg2: memref<64x32xbf16, #tpu.memory_space<vmem>>, %arg3: memref<64x1xf32, #tpu.memory_space<vmem>>, %arg4: memref<64x64xbf16, #tpu.memory_space<vmem>>, %arg5: memref<64x1xf32, #tpu.memory_space<vmem>>, %arg6: memref<1x64xbf16, #tpu.memory_space<vmem>>, %arg7: memref<1x1xf32, #tpu.memory_space<vmem>>, %arg8: memref<1x128xf32, #tpu.memory_space<vmem>>) attributes {dimension_semantics = [#tpu.dimension_semantics<parallel>], iteration_bounds = array<i64: 3>, scalar_prefetch = 0 : i64, scratch_operands = 0 : i64, tpu.core_type = #tpu.core_type<tc>, window_params = [{transform_indices = @transform_0, window_bounds = array<i64: 128, 32>}, {pipeline_mode = #tpu.pipeline_mode<synchronous>, transform_indices = @transform_1, window_bounds = array<i64: 64, 32>}, {pipeline_mode = #tpu.pipeline_mode<synchronous>, transform_indices = @transform_2, window_bounds = array<i64: 64, 1>}, {pipeline_mode = #tpu.pipeline_mode<synchronous>, transform_indices = @transform_3, window_bounds = array<i64: 64, 64>}, {pipeline_mode = #tpu.pipeline_mode<synchronous>, transform_indices = @transform_4, window_bounds = array<i64: 64, 1>}, {pipeline_mode = #tpu.pipeline_mode<synchronous>, transform_indices = @transform_5, window_bounds = array<i64: 1, 64>}, {pipeline_mode = #tpu.pipeline_mode<synchronous>, transform_indices = @transform_6, window_bounds = array<i64: 1, 1>}, {transform_indices = @transform_7, window_bounds = array<i64: 1, 128>}]} {
    %c0 = arith.constant 0 : index
    %c0_0 = arith.constant 0 : index
    %0 = vector.load %arg1[%c0, %c0_0] : memref<128x32xbf16, #tpu.memory_space<vmem>>, vector<128x32xbf16>
    %c0_1 = arith.constant 0 : index
    %c0_2 = arith.constant 0 : index
    %1 = vector.load %arg2[%c0_1, %c0_2] : memref<64x32xbf16, #tpu.memory_space<vmem>>, vector<64x32xbf16>
    %cst = arith.constant dense<0.000000e+00> : vector<64x128xf32>
    %2 = tpu.matmul %1, %0, %cst {dimension_numbers = #tpu.dot_dimension_numbers<[1], [1], [0], [0], [0, 0, 1, 0], [], []>} : vector<64x32xbf16>, vector<128x32xbf16>, vector<64x128xf32> -> vector<64x128xf32>
    %c0_3 = arith.constant 0 : index
    %c0_4 = arith.constant 0 : index
    %3 = vector.load %arg3[%c0_3, %c0_4] : memref<64x1xf32, #tpu.memory_space<vmem>>, vector<64x1xf32>
    %4 = vector.broadcast %3 : vector<64x1xf32> to vector<64x128xf32>
    %5 = arith.addf %2, %4 : vector<64x128xf32>
    %cst_5 = arith.constant 0.000000e+00 : f32
    %6 = vector.broadcast %cst_5 : f32 to vector<64x128xf32>
    %7 = arith.maximumf %5, %6 : vector<64x128xf32>
    %8 = arith.truncf %7 : vector<64x128xf32> to vector<64x128xbf16>
    %c0_6 = arith.constant 0 : index
    %c0_7 = arith.constant 0 : index
    %9 = vector.load %arg4[%c0_6, %c0_7] : memref<64x64xbf16, #tpu.memory_space<vmem>>, vector<64x64xbf16>
    %cst_8 = arith.constant dense<0.000000e+00> : vector<64x128xf32>
    %10 = tpu.matmul %9, %8, %cst_8 {dimension_numbers = #tpu.dot_dimension_numbers<[1], [0], [0], [1], [0, 0, 1, 1], [], []>} : vector<64x64xbf16>, vector<64x128xbf16>, vector<64x128xf32> -> vector<64x128xf32>
    %c0_9 = arith.constant 0 : index
    %c0_10 = arith.constant 0 : index
    %11 = vector.load %arg5[%c0_9, %c0_10] : memref<64x1xf32, #tpu.memory_space<vmem>>, vector<64x1xf32>
    %12 = vector.broadcast %11 : vector<64x1xf32> to vector<64x128xf32>
    %13 = arith.addf %10, %12 : vector<64x128xf32>
    %cst_11 = arith.constant 0.000000e+00 : f32
    %14 = vector.broadcast %cst_11 : f32 to vector<64x128xf32>
    %15 = arith.maximumf %13, %14 : vector<64x128xf32>
    %16 = arith.truncf %15 : vector<64x128xf32> to vector<64x128xbf16>
    %c0_12 = arith.constant 0 : index
    %c0_13 = arith.constant 0 : index
    %17 = vector.load %arg6[%c0_12, %c0_13] : memref<1x64xbf16, #tpu.memory_space<vmem>>, vector<1x64xbf16>
    %cst_14 = arith.constant dense<0.000000e+00> : vector<1x128xf32>
    %18 = tpu.matmul %17, %16, %cst_14 {dimension_numbers = #tpu.dot_dimension_numbers<[1], [0], [0], [1], [0, 0, 1, 1], [], []>} : vector<1x64xbf16>, vector<64x128xbf16>, vector<1x128xf32> -> vector<1x128xf32>
    %c0_15 = arith.constant 0 : index
    %c0_16 = arith.constant 0 : index
    %19 = vector.load %arg7[%c0_15, %c0_16] : memref<1x1xf32, #tpu.memory_space<vmem>>, vector<1x1xf32>
    %20 = vector.broadcast %19 : vector<1x1xf32> to vector<1x128xf32>
    %21 = arith.addf %18, %20 : vector<1x128xf32>
    %c0_17 = arith.constant 0 : index
    %c0_18 = arith.constant 0 : index
    %22 = vector.load %arg8[%c0_17, %c0_18] : memref<1x128xf32, #tpu.memory_space<vmem>>, vector<1x128xf32>
    tpu.vector_store %arg8[%c0_17, %c0_18], %21 {strides = array<i32>} : memref<1x128xf32, #tpu.memory_space<vmem>>, vector<1x128xf32>,
    return
  }
  func.func @transform_0(%arg0: i32) -> (i32, i32) {
    %c0_i32 = arith.constant 0 : i32
    %c0_i32_0 = arith.constant 0 : i32
    return %arg0, %c0_i32 : i32, i32
  }
  func.func @transform_1(%arg0: i32) -> (i32, i32) {
    %c0_i32 = arith.constant 0 : i32
    %c0_i32_0 = arith.constant 0 : i32
    %c0_i32_1 = arith.constant 0 : i32
    return %c0_i32, %c0_i32_0 : i32, i32
  }
  func.func @transform_2(%arg0: i32) -> (i32, i32) {
    %c0_i32 = arith.constant 0 : i32
    %c0_i32_0 = arith.constant 0 : i32
    %c0_i32_1 = arith.constant 0 : i32
    return %c0_i32, %c0_i32_0 : i32, i32
  }
  func.func @transform_3(%arg0: i32) -> (i32, i32) {
    %c0_i32 = arith.constant 0 : i32
    %c0_i32_0 = arith.constant 0 : i32
    %c0_i32_1 = arith.constant 0 : i32
    return %c0_i32, %c0_i32_0 : i32, i32
  }
  func.func @transform_4(%arg0: i32) -> (i32, i32) {
    %c0_i32 = arith.constant 0 : i32
    %c0_i32_0 = arith.constant 0 : i32
    %c0_i32_1 = arith.constant 0 : i32
    return %c0_i32, %c0_i32_0 : i32, i32
  }
  func.func @transform_5(%arg0: i32) -> (i32, i32) {
    %c0_i32 = arith.constant 0 : i32
    %c0_i32_0 = arith.constant 0 : i32
    %c0_i32_1 = arith.constant 0 : i32
    return %c0_i32, %c0_i32_0 : i32, i32
  }
  func.func @transform_6(%arg0: i32) -> (i32, i32) {
    %c0_i32 = arith.constant 0 : i32
    %c0_i32_0 = arith.constant 0 : i32
    %c0_i32_1 = arith.constant 0 : i32
    return %c0_i32, %c0_i32_0 : i32, i32
  }
  func.func @transform_7(%arg0: i32) -> (i32, i32) {
    %c0_i32 = arith.constant 0 : i32
    %c0_i32_0 = arith.constant 0 : i32
    return %c0_i32, %arg0 : i32, i32
  }
}

</mosaic_0001>

<bundles_post_ra>
// kernel: _value_network_forward.1
= control target key start
LH: loop header
LB: loop body
LE: loop exit
PB: predicated region body
PF: predicated region fallthrough
CT: control target
= control target key end

     0   :  { %s870_s26 = smov 0   ;;  %s994_s0 = inlined_call_operand.vmem [shape: bf16[384,32], index: 0, kind: input, shape index: {}]   ;;  %s995_s1 = inlined_call_operand.vmem [shape: bf16[64,32], index: 1, kind: input, shape index: {}]   ;;  %s996_s2 = inlined_call_operand.vmem [shape: f32[64,1], index: 2, kind: input, shape index: {}]   ;;  %s997_s3 = inlined_call_operand.vmem [shape: bf16[64,64], index: 3, kind: input, shape index: {}]   ;;  %s998_s4 = inlined_call_operand.vmem [shape: f32[64,1], index: 4, kind: input, shape index: {}]   ;;  %s999_s5 = inlined_call_operand.vmem [shape: bf16[1,64], index: 5, kind: input, shape index: {}]   ;;  %s1000_s6 = inlined_call_operand.<no memory space> [shape: f32[1,1], index: 6, kind: input, shape index: {}]   ;;  %s1001_s7 = inlined_call_operand.vmem [shape: f32[1,384], index: 7, kind: output, shape index: {}]  }
   0x1   :  { %v12_v0 = vstv %s1000_s6 }
   0x2   :  { %13 = vst [vmem:[#allocation2] sm:$0x1] %v12_v0 }
   0x3 LB: > { %s876_s27 = sadd.s32 4294967295, %s824_s26   ;;  %p696_p0 = scmp.ge.s32.totalorder %s824_s26, 1  ;;  %s824_s26 = sphi %s870_s26, %s19_s26  }
   0x4   : > { %p240_p1 = scmp.lt.s32.totalorder %s824_s26, 4 }
   0x6   : > { %p241_p2 = pnand %p696_p0, %p240_p1 }
   0x7   : > { %s697_s28 = sshll.u32 (!%p241_p2), %s876_s27, 4  ;;  %p276_p4 = scmp.lt.s32.totalorder (!%p241_p2), %s876_s27, 2 }
   0x8   : > { %244 = sbr.rel (%p241_p2) target bundleno = 601 (0x259), region = 48  ;;  %p271_p3 = scmp.lt.s32.totalorder (!%p241_p2), %s697_s28, 47 }
   0xd   : > { %s1003_s28 = smov (!%p271_p3, %s697_s28), 47  ;;  %vm412_vm0 = vcmask 261120   ;;  %v310_v7 = vld [vmem:[%s996_s2 + $0x30] sm:$0xff]  ;;  %v826_v9 = vmov 0   ;;  %v308_v11 = vld [vmem:[%s996_s2 + $0x20] sm:$0xff]  ;;  %v311_v14 = vld [vmem:[%s996_s2 + $0x38] sm:$0xff] }
   0xe   : > { %s698_s6 = sshll.u32 %s1003_s28, 2  ;;  %815 = vset.pattern.permute.xlu0 %v826_v9  ;;  %816 = vset.pattern.permute.xlu1 %v826_v9  ;;  %v309_v15 = vld [vmem:[%s996_s2 + $0x28] sm:$0xff]  ;;  %v304_v18 = vld [vmem:[%s996_s2] sm:$0xff]  ;;  %v505_v22 = vld [vmem:[%s998_s4 + $0x38] sm:$0xff]  ;;  %vm566_vm1 = vcmask 523264   ;;  %s1005_s27 = smov (!%p276_p4, %s876_s27), 2 }
   0xf   : > { %s884_s8 = scalar_lea.vmem %s994_s0, %s698_s6  ;;  %344 = vperm.xlu0 %815, %v310_v7   ;;  %817 = vset.pattern.permute.xlu2 %v826_v9  ;;  %v305_v19 = vld [vmem:[%s996_s2 + $0x8] sm:$0xff]  ;;  %v502_v23 = vld [vmem:[%s998_s4 + $0x20] sm:$0xff]  ;;  %v306_v24 = vld [vmem:[%s996_s2 + $0x10] sm:$0xff]  ;;  %s278_s17 = scalar_lea.vmem %s1001_s7, %s1005_s27 }
  0x10   : > { %v781_v1 = vld [vmem:[%s884_s8 + $0x38] sm:$0xff]  ;;  %v780_v3 = vld [vmem:[%s884_s8 + $0x30] sm:$0xff]  ;;  %v779_v5 = vld [vmem:[%s884_s8 + $0x28] sm:$0xff]  ;;  %334 = vperm.xlu1 %816, %v308_v11   ;;  %324 = vperm.xlu2 %817, %v306_v24  }
  0x11   : > { %v447_v2 = vsel %vm412_vm0, %v781_v1, 0  ;;  %v444_v4 = vsel %vm412_vm0, %v780_v3, 0  ;;  %v441_v6 = vsel %vm412_vm0, %v779_v5, 0  ;;  %v778_v8 = vld [vmem:[%s884_s8 + $0x20] sm:$0xff]  ;;  %v777_v12 = vld [vmem:[%s884_s8 + $0x18] sm:$0xff]  ;;  %v776_v16 = vld [vmem:[%s884_s8 + $0x10] sm:$0xff] }
  0x12   : > { %791 = vmatpush.bf16.xpose.msra.mxu3 %v447_v2  ;;  %449 = vmatpush.bf16.xpose.msra.mxu0 %v447_v2  ;;  %v438_v10 = vsel %vm412_vm0, %v778_v8, 0  ;;  %v435_v13 = vsel %vm412_vm0, %v777_v12, 0  ;;  %v432_v17 = vsel %vm412_vm0, %v776_v16, 0  ;;  %v775_v20 = vld [vmem:[%s884_s8 + $0x8] sm:$0xff]  ;;  %v774_v25 = vld [vmem:[%s884_s8] sm:$0xff]  ;;  %v500_v27 = vld [vmem:[%s998_s4 + $0x10] sm:$0xff] }
  0x13   : > { %790 = vmatpush.bf16.xpose.msra.mxu2 %v447_v2  ;;  %v429_v21 = vsel %vm412_vm0, %v775_v20, 0  ;;  %v426_v26 = vsel %vm412_vm0, %v774_v25, 0  ;;  %v501_v28 = vld [vmem:[%s998_s4 + $0x18] sm:$0xff]  ;;  %v784_v30 = vld [vmem:[%s995_s1 + $0x10] sm:$0xff]  ;;  %v782_v31 = vld [vmem:[%s995_s1] sm:$0xff] }
  0x14   : > { %v307_v29 = vld [vmem:[%s996_s2 + $0x18] sm:$0xff]  ;;  %v783_v32 = vld [vmem:[%s995_s1 + $0x8] sm:$0xff]  ;;  %v621_v34 = vld [vmem:[#allocation2] sm:$0x1] }
  0x15   : > { %v499_v33 = vld [vmem:[%s998_s4 + $0x8] sm:$0xff]  ;;  %v504_v35 = vld [vmem:[%s998_s4 + $0x30] sm:$0xff]  ;;  %v785_v37 = vld [vmem:[%s995_s1 + $0x18] sm:$0xff] }
  0x16   : > { %v503_v36 = vld [vmem:[%s998_s4 + $0x28] sm:$0xff]  ;;  %v498_v38 = vld [vmem:[%s998_s4] sm:$0xff] }
  0x17   : > { %349 = vperm.xlu0 %815, %v311_v14   ;;  %v786_v11 = vld [vmem:[%s997_s3] sm:$0xff]  ;;  %v787_v12 = vld [vmem:[%s997_s3 + $0x8] sm:$0xff]  ;;  %v789_v14 = vld [vmem:[%s997_s3 + $0x18] sm:$0xff] }
  0x18   : > { %339 = vperm.xlu1 %816, %v309_v15   ;;  %329 = vperm.xlu2 %817, %v307_v29  }
  0x1a   : > { %793 = vmatpush.bf16.xpose.msra.mxu3 %v444_v4  ;;  %450 = vmatpush.bf16.xpose.msra.mxu0 %v444_v4 }
  0x1b   : > { %792 = vmatpush.bf16.xpose.msra.mxu2 %v444_v4 }
  0x1f   : > { %314 = vperm.xlu0 %815, %v304_v18  }
  0x20   : > { %319 = vperm.xlu1 %816, %v305_v19   ;;  %538 = vperm.xlu2 %817, %v504_v35  }
  0x22   : > { %795 = vmatpush.bf16.xpose.msra.mxu3 %v441_v6  ;;  %451 = vmatpush.bf16.xpose.msra.mxu0 %v441_v6 }
  0x23   : > { %794 = vmatpush.bf16.xpose.msra.mxu2 %v441_v6 }
  0x27   : > { %543 = vperm.xlu0 %815, %v505_v22  }
  0x28   : > { %528 = vperm.xlu1 %816, %v502_v23   ;;  %533 = vperm.xlu2 %817, %v503_v36  }
  0x2a   : > { %797 = vmatpush.bf16.xpose.msra.mxu3 %v438_v10  ;;  %452 = vmatpush.bf16.xpose.msra.mxu0 %v438_v10 }
  0x2b   : > { %796 = vmatpush.bf16.xpose.msra.mxu2 %v438_v10 }
  0x2f   : > { %518 = vperm.xlu0 %815, %v500_v27  }
  0x30   : > { %523 = vperm.xlu1 %816, %v501_v28   ;;  %508 = vperm.xlu2 %817, %v498_v38  }
  0x32   : > { %799 = vmatpush.bf16.xpose.msra.mxu3 %v435_v13  ;;  %453 = vmatpush.bf16.xpose.msra.mxu0 %v435_v13 }
  0x33   : > { %798 = vmatpush.bf16.xpose.msra.mxu2 %v435_v13  ;;  %v788_v13 = vld [vmem:[%s997_s3 + $0x10] sm:$0xff] }
  0x37   : > { %513 = vperm.xlu0 %815, %v499_v33  }
  0x38   : > { %624 = vperm.xlu1 %816, %v621_v34  }
  0x3a   : > { %801 = vmatpush.bf16.xpose.msra.mxu3 %v432_v17  ;;  %454 = vmatpush.bf16.xpose.msra.mxu0 %v432_v17 }
  0x3b   : > { %800 = vmatpush.bf16.xpose.msra.mxu2 %v432_v17 }
  0x42   : > { %803 = vmatpush.bf16.xpose.msra.mxu3 %v429_v21  ;;  %455 = vmatpush.bf16.xpose.msra.mxu0 %v429_v21 }
  0x43   : > { %802 = vmatpush.bf16.xpose.msra.mxu2 %v429_v21 }
  0x4a   : > { %805 = vmatpush.bf16.xpose.msra.mxu3 %v426_v26  ;;  %456 = vmatpush.bf16.xpose.msra.mxu0 %v426_v26 }
  0x4b   : > { %804 = vmatpush.bf16.xpose.msra.mxu2 %v426_v26 }
  0x51   : > { %749 = vmatmul.msk.bf16.vlgmr.msra.gmra.mxu3 %vm412_vm0, %v784_v30  ;;  %747 = vmatmul.msk.bf16.vlgmr.msra.gmra.mxu0 %vm412_vm0, %v782_v31 }
  0x52   : > { %748 = vmatmul.msk.bf16.vlgmr.msra.gmra.mxu2 %vm412_vm0, %v783_v32 }
  0x61   : > { %750 = vmatmul.msk.bf16.gmra.mxu3 %vm412_vm0, %v785_v37 }
  0x6a   : > { %v325_v45 = vpop.permute.xlu2 %324 }
  0x72   : > { %v330_v57 = vpop.permute.xlu2 %329 }
  0x7a   : > { %v539_v22 = vpop.permute.xlu2 %538 }
  0x81   : > { %v345_v41 = vpop.permute.xlu0 %344 }
  0x82   : > { %v335_v42 = vpop.permute.xlu1 %334  ;;  %v534_v27 = vpop.permute.xlu2 %533 }
  0x89   : > { %v350_v47 = vpop.permute.xlu0 %349 }
  0x8a   : > { %v340_v48 = vpop.permute.xlu1 %339 }
  0x91   : > { %v315_v63 = vpop.permute.xlu0 %314 }
  0x92   : > { %v320_v1 = vpop.permute.xlu1 %319 }
  0x99   : > { %v544_v21 = vpop.permute.xlu0 %543 }
  0x9a   : > { %v529_v24 = vpop.permute.xlu1 %528 }
  0xa1   : > { %v519_v25 = vpop.permute.xlu0 %518 }
  0xa2   : > { %v524_v34 = vpop.permute.xlu1 %523 }
  0xce   : > { %v458_v46 = vpop.f32.mrf.mxu0 }
  0xcf   : > { %v459_v2 = vadd.f32 %v458_v46, %v315_v63 }
  0xd1   : > { %v478_v7 = vmax.f32 %v459_v2, 0.0 }
  0xd4   : > { %v468_v39 = vpop.f32.mrf.mxu3 }
  0xd5   : > { %v463_v43 = vpop.f32.mrf.mxu2  ;;  %v469_v54 = vadd.f32 %v468_v39, %v335_v42 }
  0xd6   : > { %v464_v59 = vadd.f32 %v463_v43, %v325_v45  ;;  %v460_v62 = vpop.f32.mrf.mxu0 }
  0xd7   : > { %v482_v0 = vmax.f32 %v469_v54, 0.0  ;;  %v461_v3 = vadd.f32 %v460_v62, %v320_v1 }
  0xd8   : > { %v480_v4 = vmax.f32 %v464_v59, 0.0 }
  0xd9   : > { %v479_v8 = vmax.f32 %v461_v3, 0.0 }
  0xdb   : > { %v486_v10 = vpack.c.bf16 %v479_v8, %v478_v7 }
  0xdc   : > { %v470_v40 = vpop.f32.mrf.mxu3 }
  0xdd   : > { %v471_v51 = vadd.f32 %v470_v40, %v340_v48  ;;  %v465_v53 = vpop.f32.mrf.mxu2  ;;  %v514_v40 = vpop.permute.xlu0 %513 }
  0xde   : > { %v466_v60 = vadd.f32 %v465_v53, %v330_v57 }
  0xdf   : > { %v483_v58 = vmax.f32 %v471_v51, 0.0  ;;  %v620_v51 = vld [vmem:[%s999_s5] sm:$0x1] }
  0xe0   : > { %v481_v5 = vmax.f32 %v466_v60, 0.0 }
  0xe1   : > { %v488_v6 = vpack.c.bf16 %v483_v58, %v482_v0 }
  0xe2   : > { %v487_v9 = vpack.c.bf16 %v481_v5, %v480_v4 }
  0xe4   : > { %v473_v44 = vpop.f32.mrf.mxu3 }
  0xe5   : > { %v474_v49 = vadd.f32 %v473_v44, %v345_v41  ;;  %v509_v44 = vpop.permute.xlu2 %508 }
  0xe7   : > { %v484_v55 = vmax.f32 %v474_v49, 0.0 }
  0xec   : > { %v475_v50 = vpop.f32.mrf.mxu3 }
  0xed   : > { %v476_v52 = vadd.f32 %v475_v50, %v350_v47 }
  0xef   : > { %v485_v56 = vmax.f32 %v476_v52, 0.0  ;;  %v625_v52 = vpop.permute.xlu1 %624 }
  0xf0   : > { %v627_v53 = vperm.slane %v625_v52, 0 }
  0xf1   : > { %v489_v61 = vpack.c.bf16 %v485_v56, %v484_v55 }
  0xf3   : > { %583 = vmatpush.bf16.msra.mxu1 %v489_v61 }
  0xf7   : > { %584 = vmatpush.bf16.msra.mxu1 %v488_v6 }
  0xfb   : > { %585 = vmatpush.bf16.msra.mxu1 %v487_v9 }
  0xff   : > { %586 = vmatpush.bf16.msra.mxu1 %v486_v10 }
 0x102   : > { %767 = vmatmul.msk.bf16.vlgmr.msra.gmra.mxu1 %vm566_vm1, %v786_v11 }
 0x112   : > { %768 = vmatmul.msk.bf16.gmra.mxu1 %vm566_vm1, %v787_v12 }
 0x122   : > { %769 = vmatmul.msk.bf16.gmra.mxu1 %vm566_vm1, %v788_v13 }
 0x132   : > { %770 = vmatmul.msk.bf16.gmra.mxu1 %vm566_vm1, %v789_v14 }
 0x17f   : > { %v588_v15 = vpop.f32.mrf.mxu1 }
 0x180   : > { %v589_v45 = vadd.f32 %v588_v15, %v509_v44 }
 0x182   : > { %v608_v49 = vmax.f32 %v589_v45, 0.0 }
 0x187   : > { %v590_v16 = vpop.f32.mrf.mxu1 }
 0x188   : > { %v591_v41 = vadd.f32 %v590_v16, %v514_v40 }
 0x18a   : > { %v609_v47 = vmax.f32 %v591_v41, 0.0 }
 0x18c   : > { %v616_v50 = vpack.c.bf16 %v609_v47, %v608_v49 }
 0x18f   : > { %v593_v17 = vpop.f32.mrf.mxu1 }
 0x190   : > { %v594_v38 = vadd.f32 %v593_v17, %v519_v25 }
 0x192   : > { %v610_v46 = vmax.f32 %v594_v38, 0.0 }
 0x197   : > { %v595_v18 = vpop.f32.mrf.mxu1 }
 0x198   : > { %v596_v35 = vadd.f32 %v595_v18, %v524_v34 }
 0x19a   : > { %v611_v42 = vmax.f32 %v596_v35, 0.0 }
 0x19c   : > { %v617_v48 = vpack.c.bf16 %v611_v42, %v610_v46 }
 0x19f   : > { %v598_v19 = vpop.f32.mrf.mxu1 }
 0x1a0   : > { %v599_v31 = vadd.f32 %v598_v19, %v529_v24 }
 0x1a2   : > { %v612_v39 = vmax.f32 %v599_v31, 0.0 }
 0x1a7   : > { %v600_v20 = vpop.f32.mrf.mxu1 }
 0x1a8   : > { %v601_v29 = vadd.f32 %v600_v20, %v534_v27 }
 0x1aa   : > { %v613_v36 = vmax.f32 %v601_v29, 0.0 }
 0x1ac   : > { %v618_v43 = vpack.c.bf16 %v613_v36, %v612_v39 }
 0x1af   : > { %v603_v23 = vpop.f32.mrf.mxu1 }
 0x1b0   : > { %v604_v26 = vadd.f32 %v603_v23, %v539_v22 }
 0x1b2   : > { %v614_v32 = vmax.f32 %v604_v26, 0.0 }
 0x1b7   : > { %v605_v28 = vpop.f32.mrf.mxu1 }
 0x1b8   : > { %v606_v30 = vadd.f32 %v605_v28, %v544_v21 }
 0x1ba   : > { %v615_v33 = vmax.f32 %v606_v30, 0.0 }
 0x1bc   : > { %v619_v37 = vpack.c.bf16 %v615_v33, %v614_v32 }
 0x1be   : > { %635 = vmatpush.bf16.msrb.mxu2 %v619_v37 }
 0x1c2   : > { %636 = vmatpush.bf16.msrb.mxu2 %v618_v43 }
 0x1c6   : > { %637 = vmatpush.bf16.msrb.mxu2 %v617_v48 }
 0x1ca   : > { %638 = vmatpush.bf16.msrb.mxu2 %v616_v50 }
 0x1cd   : > { %771 = vmatmul.msk.bf16.vlgmr.msrb.gmra.mxu2 %vm566_vm1, %v620_v51 }
 0x250   : > { %v640_v54 = vpop.f32.mrf.mxu2 }
 0x251   : > { %v641_v55 = vadd.f32 %v640_v54, %v627_v53 }
 0x253   : > { %644 = vst [vmem:[%s278_s17] sm:$0x1] %v641_v55 }
 0x258   : > { %v642_v56 = vpop.f32.mrf.mxu2 }
 0x259 PF: > { %s19_s26 = sadd.s32 1, %s824_s26  }
 0x25a   : > { %p16_p5 = scmp.ge.s32.totalorder %s19_s26, 5  }
 0x25c   :  { %18 = sbr.rel (!%p16_p5) target bundleno = 3 (0x3), region = 78 }

</bundles_post_ra>
